<compile_context>
chip_gen: v5e
topology: v5e:2x2
jax: 0.10.0
libtpu: 0.0.40
codegen_flags: <defaults>
</compile_context>

<pallas_src>
import functools

import jax
import jax.numpy as jnp
from jax.experimental import pallas as pl
from jax.experimental.pallas import tpu as pltpu


def _round_up(x, m):
    return ((x + m - 1) // m) * m


# ----------------------------- Pallas kernel ------------------------------ #
def _gcn_agg_kernel(a_ref, xw_ref, b_ref, o_ref, acc_ref, *, apply_relu):
    """Aggregation: out_tile = act( sum_k A[i,k] @ XW[k,:] + b )."""
    k = pl.program_id(1)

    @pl.when(k == 0)
    def _():
        acc_ref[...] = jnp.zeros_like(acc_ref)

    acc_ref[...] += jnp.dot(
        a_ref[...], xw_ref[...], preferred_element_type=jnp.float32
    )

    @pl.when(k == pl.num_programs(1) - 1)
    def _():
        h = acc_ref[...] + b_ref[...]  # bias added once per row tile
        if apply_relu:
            h = jnp.maximum(h, 0.0)
        o_ref[...] = h.astype(o_ref.dtype)


def gcn_layer(a_hat, x, w, b, *, apply_relu):
    """One GraphConv layer: act(A_hat @ (X @ W) + b) via a Pallas aggregation."""
    n = a_hat.shape[0]
    f_out = w.shape[1]

    # Hoisted X @ W precompute (bf16 on the MXU, f32 accumulate).
    xw = jnp.dot(
        x.astype(jnp.bfloat16), w.astype(jnp.bfloat16),
        preferred_element_type=jnp.float32,
    )

    # Tiling: large graphs get 128-row tiles with K-tiling (tile_k=512) so the
    # VMEM footprint is bounded independent of N; tiny graphs run as one block.
    if n <= 128:
        tile_n = _round_up(n, 8)
        n_pad = tile_n
        tile_k = n_pad
    else:
        tile_n = 128
        tile_k = 512
        n_pad = _round_up(n, tile_k)
    f_out_p = _round_up(f_out, 128)  # lane-dense output (no masked stores)

    a_p = jnp.pad(a_hat.astype(jnp.bfloat16), ((0, n_pad - n), (0, n_pad - n)))
    xw_p = jnp.pad(xw.astype(jnp.bfloat16),
                   ((0, n_pad - n), (0, f_out_p - f_out)))
    b_p = jnp.pad(b.astype(jnp.float32).reshape(1, f_out),
                  ((0, 0), (0, f_out_p - f_out)))

    grid = (n_pad // tile_n, n_pad // tile_k)
    kernel = functools.partial(_gcn_agg_kernel, apply_relu=apply_relu)

    cost = pl.CostEstimate(
        flops=2 * n_pad * n_pad * f_out_p,
        transcendentals=0,
        bytes_accessed=(n_pad * n_pad * 2          # A_hat (bf16)
                        + n_pad * f_out_p * 2      # XW (bf16)
                        + n_pad * f_out_p * 4),    # output (f32)
    )

    out = pl.pallas_call(
        kernel,
        out_shape=jax.ShapeDtypeStruct((n_pad, f_out_p), jnp.float32),
        grid_spec=pltpu.PrefetchScalarGridSpec(
            num_scalar_prefetch=0,
            grid=grid,
            in_specs=[
                pl.BlockSpec((tile_n, tile_k), lambda i, k: (i, k)),    # A tile
                pl.BlockSpec((tile_k, f_out_p), lambda i, k: (k, 0)),   # XW tile
                pl.BlockSpec((1, f_out_p), lambda i, k: (0, 0)),        # bias
            ],
            out_specs=pl.BlockSpec((tile_n, f_out_p), lambda i, k: (i, 0)),
            scratch_shapes=[pltpu.VMEM((tile_n, f_out_p), jnp.float32)],
        ),
        compiler_params=pltpu.CompilerParams(
            # Row axis parallel (megacore on v7x); K reduction axis arbitrary.
            dimension_semantics=("parallel", "arbitrary"),
        ),
        cost_estimate=cost,
    )(a_p, xw_p, b_p)

    return out[:n, :f_out]


# ------------------------------- GCN module -------------------------------- #
def init_gcn_params(key, in_feats, n_hidden, n_classes, n_layers):
    """Glorot-uniform weights + zero biases (DGL GraphConv init)."""
    dims = [in_feats] + [n_hidden] * n_layers + [n_classes]
    params = []
    for li in range(len(dims) - 1):
        key, wk = jax.random.split(key)
        fan_in, fan_out = dims[li], dims[li + 1]
        limit = (6.0 / (fan_in + fan_out)) ** 0.5
        w = jax.random.uniform(
            wk, (fan_in, fan_out), jnp.float32, minval=-limit, maxval=limit
        )
        b = jnp.zeros((fan_out,), jnp.float32)
        params.append((w, b))
    return params


def normalize_adjacency(adj):
    """A_hat = D_dst^{-1/2} A D_src^{-1/2}  (DGL GraphConv norm='both')."""
    adj = adj.astype(jnp.float32)
    deg_dst = jnp.sum(adj, axis=1)
    deg_src = jnp.sum(adj, axis=0)
    inv_sqrt_dst = jnp.where(deg_dst > 0, 1.0 / jnp.sqrt(deg_dst), 0.0)
    inv_sqrt_src = jnp.where(deg_src > 0, 1.0 / jnp.sqrt(deg_src), 0.0)
    return inv_sqrt_dst[:, None] * adj * inv_sqrt_src[None, :]


def gcn_forward(a_hat, features, params):
    h = features
    n_layers_total = len(params)
    for i, (w, b) in enumerate(params):
        # i != 0: dropout in the PyTorch module -> identity at inference.
        apply_relu = i < n_layers_total - 1  # no activation on the last layer
        h = gcn_layer(a_hat, h, w, b, apply_relu=apply_relu)
    return h


def gcn_forward_reference(a_hat, features, params):
    """Pure-JAX reference with the same bf16 MXU casts as the kernel path."""
    h = features
    a_bf = a_hat.astype(jnp.bfloat16)
    for i, (w, b) in enumerate(params):
        xw = jnp.dot(h.astype(jnp.bfloat16), w.astype(jnp.bfloat16),
                     preferred_element_type=jnp.float32)
        h = jnp.dot(a_bf, xw.astype(jnp.bfloat16),
                    preferred_element_type=jnp.float32) + b[None, :]
        if i < len(params) - 1:
            h = jnp.maximum(h, 0.0)
    return h


# ---------------------------------- main ----------------------------------- #
if __name__ == "__main__":
    key = jax.random.PRNGKey(0)

    # Small synthetic graph + features.
    N = 32          # nodes
    in_feats = 16
    n_hidden = 32
    n_classes = 8
    n_layers = 2    # -> 3 GraphConv layers total (in->hid, hid->hid, hid->cls)

    key, k_adj, k_feat, k_par = jax.random.split(key, 4)

    # Random symmetric adjacency without self-loops.
    upper = (jax.random.uniform(k_adj, (N, N)) < 0.25).astype(jnp.float32)
    adj = jnp.triu(upper, k=1)
    adj = adj + adj.T
    a_hat = normalize_adjacency(adj)

    features = jax.random.normal(k_feat, (N, in_feats), jnp.float32)
    params = init_gcn_params(k_par, in_feats, n_hidden, n_classes, n_layers)

    gcn_fwd = jax.jit(gcn_forward)
    out = gcn_fwd(a_hat, features, params)
    out = jax.block_until_ready(out)

    ref = gcn_forward_reference(a_hat, features, params)
    assert out.shape == (N, n_classes)
    assert jnp.allclose(out, ref, atol=1e-2, rtol=1e-2), "mismatch vs reference"

    print("KERNEL_OK")
</pallas_src>

<mosaic_0001>
module attributes {stable_mosaic.version = 11 : i64} {
  func.func @_gcn_agg_kernel(%arg0: i32, %arg1: i32, %arg2: memref<32x32xbf16, #tpu.memory_space<vmem>>, %arg3: memref<32x128xbf16, #tpu.memory_space<vmem>>, %arg4: memref<1x128xf32, #tpu.memory_space<vmem>>, %arg5: memref<32x128xf32, #tpu.memory_space<vmem>>, %arg6: memref<32x128xf32, #tpu.memory_space<vmem>>) attributes {dimension_semantics = [#tpu.dimension_semantics<parallel>, #tpu.dimension_semantics<arbitrary>], iteration_bounds = array<i64: 1, 1>, scalar_prefetch = 0 : i64, scratch_operands = 1 : i64, tpu.core_type = #tpu.core_type<tc>, window_params = [{transform_indices = @transform_0, window_bounds = array<i64: 32, 32>}, {transform_indices = @transform_1, window_bounds = array<i64: 32, 128>}, {pipeline_mode = #tpu.pipeline_mode<synchronous>, transform_indices = @transform_2, window_bounds = array<i64: 1, 128>}, {transform_indices = @transform_3, window_bounds = array<i64: 32, 128>}]} {
    %c0_i32 = arith.constant 0 : i32
    %0 = arith.cmpi eq, %arg1, %c0_i32 : i32
    %1 = arith.extui %0 : i1 to i32
    %c0_i32_0 = arith.constant 0 : i32
    %2 = arith.cmpi ne, %1, %c0_i32_0 : i32
    scf.if %2 {
      %cst_10 = arith.constant 0.000000e+00 : f32
      %12 = vector.broadcast %cst_10 : f32 to vector<32x128xf32>
      %c0_11 = arith.constant 0 : index
      %c0_12 = arith.constant 0 : index
      %13 = vector.load %arg6[%c0_11, %c0_12] : memref<32x128xf32, #tpu.memory_space<vmem>>, vector<32x128xf32>
      tpu.vector_store %arg6[%c0_11, %c0_12], %12 {strides = array<i32>} : memref<32x128xf32, #tpu.memory_space<vmem>>, vector<32x128xf32>,
    } else {
    }
    %c0 = arith.constant 0 : index
    %c0_1 = arith.constant 0 : index
    %3 = vector.load %arg6[%c0, %c0_1] : memref<32x128xf32, #tpu.memory_space<vmem>>, vector<32x128xf32>
    %c0_2 = arith.constant 0 : index
    %c0_3 = arith.constant 0 : index
    %4 = vector.load %arg2[%c0_2, %c0_3] : memref<32x32xbf16, #tpu.memory_space<vmem>>, vector<32x32xbf16>
    %c0_4 = arith.constant 0 : index
    %c0_5 = arith.constant 0 : index
    %5 = vector.load %arg3[%c0_4, %c0_5] : memref<32x128xbf16, #tpu.memory_space<vmem>>, vector<32x128xbf16>
    %cst = arith.constant dense<0.000000e+00> : vector<32x128xf32>
    %6 = tpu.matmul %4, %5, %cst {dimension_numbers = #tpu.dot_dimension_numbers<[1], [0], [0], [1], [0, 0, 1, 1], [], []>} : vector<32x32xbf16>, vector<32x128xbf16>, vector<32x128xf32> -> vector<32x128xf32>
    %7 = arith.addf %3, %6 : vector<32x128xf32>
    %c0_6 = arith.constant 0 : index
    %c0_7 = arith.constant 0 : index
    %8 = vector.load %arg6[%c0_6, %c0_7] : memref<32x128xf32, #tpu.memory_space<vmem>>, vector<32x128xf32>
    tpu.vector_store %arg6[%c0_6, %c0_7], %7 {strides = array<i32>} : memref<32x128xf32, #tpu.memory_space<vmem>>, vector<32x128xf32>,
    %c0_i32_8 = arith.constant 0 : i32
    %9 = arith.cmpi eq, %arg1, %c0_i32_8 : i32
    %10 = arith.extui %9 : i1 to i32
    %c0_i32_9 = arith.constant 0 : i32
    %11 = arith.cmpi ne, %10, %c0_i32_9 : i32
    scf.if %11 {
      %c0_10 = arith.constant 0 : index
      %c0_11 = arith.constant 0 : index
      %12 = vector.load %arg6[%c0_10, %c0_11] : memref<32x128xf32, #tpu.memory_space<vmem>>, vector<32x128xf32>
      %c0_12 = arith.constant 0 : index
      %c0_13 = arith.constant 0 : index
      %13 = vector.load %arg4[%c0_12, %c0_13] : memref<1x128xf32, #tpu.memory_space<vmem>>, vector<1x128xf32>
      %14 = vector.broadcast %13 : vector<1x128xf32> to vector<32x128xf32>
      %15 = arith.addf %12, %14 : vector<32x128xf32>
      %cst_14 = arith.constant 0.000000e+00 : f32
      %16 = vector.broadcast %cst_14 : f32 to vector<32x128xf32>
      %17 = arith.maximumf %15, %16 : vector<32x128xf32>
      %c0_15 = arith.constant 0 : index
      %c0_16 = arith.constant 0 : index
      %18 = vector.load %arg5[%c0_15, %c0_16] : memref<32x128xf32, #tpu.memory_space<vmem>>, vector<32x128xf32>
      tpu.vector_store %arg5[%c0_15, %c0_16], %17 {strides = array<i32>} : memref<32x128xf32, #tpu.memory_space<vmem>>, vector<32x128xf32>,
    } else {
    }
    return
  }
  func.func @transform_0(%arg0: i32, %arg1: i32) -> (i32, i32) {
    %c0_i32 = arith.constant 0 : i32
    return %arg0, %arg1 : i32, i32
  }
  func.func @transform_1(%arg0: i32, %arg1: i32) -> (i32, i32) {
    %c0_i32 = arith.constant 0 : i32
    %c0_i32_0 = arith.constant 0 : i32
    return %arg1, %c0_i32 : i32, i32
  }
  func.func @transform_2(%arg0: i32, %arg1: i32) -> (i32, i32) {
    %c0_i32 = arith.constant 0 : i32
    %c0_i32_0 = arith.constant 0 : i32
    %c0_i32_1 = arith.constant 0 : i32
    return %c0_i32, %c0_i32_0 : i32, i32
  }
  func.func @transform_3(%arg0: i32, %arg1: i32) -> (i32, i32) {
    %c0_i32 = arith.constant 0 : i32
    %c0_i32_0 = arith.constant 0 : i32
    return %arg0, %c0_i32 : i32, i32
  }
}

module attributes {stable_mosaic.version = 11 : i64} {
  func.func @_gcn_agg_kernel(%arg0: i32, %arg1: i32, %arg2: memref<32x32xbf16, #tpu.memory_space<vmem>>, %arg3: memref<32x128xbf16, #tpu.memory_space<vmem>>, %arg4: memref<1x128xf32, #tpu.memory_space<vmem>>, %arg5: memref<32x128xf32, #tpu.memory_space<vmem>>, %arg6: memref<32x128xf32, #tpu.memory_space<vmem>>) attributes {dimension_semantics = [#tpu.dimension_semantics<parallel>, #tpu.dimension_semantics<arbitrary>], iteration_bounds = array<i64: 1, 1>, scalar_prefetch = 0 : i64, scratch_operands = 1 : i64, tpu.core_type = #tpu.core_type<tc>, window_params = [{transform_indices = @transform_0, window_bounds = array<i64: 32, 32>}, {transform_indices = @transform_1, window_bounds = array<i64: 32, 128>}, {pipeline_mode = #tpu.pipeline_mode<synchronous>, transform_indices = @transform_2, window_bounds = array<i64: 1, 128>}, {transform_indices = @transform_3, window_bounds = array<i64: 32, 128>}]} {
    %c0_i32 = arith.constant 0 : i32
    %0 = arith.cmpi eq, %arg1, %c0_i32 : i32
    %1 = arith.extui %0 : i1 to i32
    %c0_i32_0 = arith.constant 0 : i32
    %2 = arith.cmpi ne, %1, %c0_i32_0 : i32
    scf.if %2 {
      %cst_10 = arith.constant 0.000000e+00 : f32
      %12 = vector.broadcast %cst_10 : f32 to vector<32x128xf32>
      %c0_11 = arith.constant 0 : index
      %c0_12 = arith.constant 0 : index
      %13 = vector.load %arg6[%c0_11, %c0_12] : memref<32x128xf32, #tpu.memory_space<vmem>>, vector<32x128xf32>
      tpu.vector_store %arg6[%c0_11, %c0_12], %12 {strides = array<i32>} : memref<32x128xf32, #tpu.memory_space<vmem>>, vector<32x128xf32>,
    } else {
    }
    %c0 = arith.constant 0 : index
    %c0_1 = arith.constant 0 : index
    %3 = vector.load %arg6[%c0, %c0_1] : memref<32x128xf32, #tpu.memory_space<vmem>>, vector<32x128xf32>
    %c0_2 = arith.constant 0 : index
    %c0_3 = arith.constant 0 : index
    %4 = vector.load %arg2[%c0_2, %c0_3] : memref<32x32xbf16, #tpu.memory_space<vmem>>, vector<32x32xbf16>
    %c0_4 = arith.constant 0 : index
    %c0_5 = arith.constant 0 : index
    %5 = vector.load %arg3[%c0_4, %c0_5] : memref<32x128xbf16, #tpu.memory_space<vmem>>, vector<32x128xbf16>
    %cst = arith.constant dense<0.000000e+00> : vector<32x128xf32>
    %6 = tpu.matmul %4, %5, %cst {dimension_numbers = #tpu.dot_dimension_numbers<[1], [0], [0], [1], [0, 0, 1, 1], [], []>} : vector<32x32xbf16>, vector<32x128xbf16>, vector<32x128xf32> -> vector<32x128xf32>
    %7 = arith.addf %3, %6 : vector<32x128xf32>
    %c0_6 = arith.constant 0 : index
    %c0_7 = arith.constant 0 : index
    %8 = vector.load %arg6[%c0_6, %c0_7] : memref<32x128xf32, #tpu.memory_space<vmem>>, vector<32x128xf32>
    tpu.vector_store %arg6[%c0_6, %c0_7], %7 {strides = array<i32>} : memref<32x128xf32, #tpu.memory_space<vmem>>, vector<32x128xf32>,
    %c0_i32_8 = arith.constant 0 : i32
    %9 = arith.cmpi eq, %arg1, %c0_i32_8 : i32
    %10 = arith.extui %9 : i1 to i32
    %c0_i32_9 = arith.constant 0 : i32
    %11 = arith.cmpi ne, %10, %c0_i32_9 : i32
    scf.if %11 {
      %c0_10 = arith.constant 0 : index
      %c0_11 = arith.constant 0 : index
      %12 = vector.load %arg6[%c0_10, %c0_11] : memref<32x128xf32, #tpu.memory_space<vmem>>, vector<32x128xf32>
      %c0_12 = arith.constant 0 : index
      %c0_13 = arith.constant 0 : index
      %13 = vector.load %arg4[%c0_12, %c0_13] : memref<1x128xf32, #tpu.memory_space<vmem>>, vector<1x128xf32>
      %14 = vector.broadcast %13 : vector<1x128xf32> to vector<32x128xf32>
      %15 = arith.addf %12, %14 : vector<32x128xf32>
      %c0_14 = arith.constant 0 : index
      %c0_15 = arith.constant 0 : index
      %16 = vector.load %arg5[%c0_14, %c0_15] : memref<32x128xf32, #tpu.memory_space<vmem>>, vector<32x128xf32>
      tpu.vector_store %arg5[%c0_14, %c0_15], %15 {strides = array<i32>} : memref<32x128xf32, #tpu.memory_space<vmem>>, vector<32x128xf32>,
    } else {
    }
    return
  }
  func.func @transform_0(%arg0: i32, %arg1: i32) -> (i32, i32) {
    %c0_i32 = arith.constant 0 : i32
    return %arg0, %arg1 : i32, i32
  }
  func.func @transform_1(%arg0: i32, %arg1: i32) -> (i32, i32) {
    %c0_i32 = arith.constant 0 : i32
    %c0_i32_0 = arith.constant 0 : i32
    return %arg1, %c0_i32 : i32, i32
  }
  func.func @transform_2(%arg0: i32, %arg1: i32) -> (i32, i32) {
    %c0_i32 = arith.constant 0 : i32
    %c0_i32_0 = arith.constant 0 : i32
    %c0_i32_1 = arith.constant 0 : i32
    return %c0_i32, %c0_i32_0 : i32, i32
  }
  func.func @transform_3(%arg0: i32, %arg1: i32) -> (i32, i32) {
    %c0_i32 = arith.constant 0 : i32
    %c0_i32_0 = arith.constant 0 : i32
    return %arg0, %c0_i32 : i32, i32
  }
}

</mosaic_0001>

<bundles_post_ra>
// kernel: gcn_forward.3
= control target key start
LH: loop header
LB: loop body
LE: loop exit
PB: predicated region body
PF: predicated region fallthrough
CT: control target
= control target key end

     0   :  { %vm57_vm0 = vcmask 261120   ;;  %s190_s1 = inlined_call_operand.vmem [shape: bf16[32,128], index: 1, kind: input, shape index: {}]   ;;  %s191_s2 = inlined_call_operand.vmem [shape: f32[1,128], index: 2, kind: input, shape index: {}]   ;;  %s192_s0 = inlined_call_operand.vmem [shape: bf16[32,32], index: 0, kind: input, shape index: {}]   ;;  %s193_s3 = inlined_call_operand.vmem [shape: f32[32,128], index: 3, kind: output, shape index: {}]  }
   0x1   :  { %v139_v0 = vld [vmem:[%s190_s1 + $0x8] sm:$0xff]  ;;  %v138_v1 = vld [vmem:[%s190_s1] sm:$0xff] }
   0x2   :  { %70 = vmatpush.bf16.msra.mxu0 %v139_v0  ;;  %140 = vmatpush.bf16.msra.mxu1 %v139_v0  ;;  %v136_v2 = vld [vmem:[%s192_s0] sm:$0xff]  ;;  %v137_v3 = vld [vmem:[%s192_s0 + $0x8] sm:$0xff] }
   0x3   :  { %v142_v4 = vld [vmem:[%s191_s2] ss:$0 sm:$0xff] }
   0x6   :  { %71 = vmatpush.bf16.msra.mxu0 %v138_v1  ;;  %141 = vmatpush.bf16.msra.mxu1 %v138_v1 }
   0x9   :  { %134 = vmatmul.msk.bf16.vlgmr.msra.gmra.mxu0 %vm57_vm0, %v136_v2  ;;  %135 = vmatmul.msk.bf16.vlgmr.msra.gmra.mxu1 %vm57_vm0, %v137_v3 }
  0x86   :  { %v73_v5 = vpop.f32.mrf.mxu0  ;;  %v78_v6 = vpop.f32.mrf.mxu1 }
  0x87   :  { %v102_v7 = vadd.f32 %v142_v4, %v73_v5  ;;  %v104_v8 = vadd.f32 %v142_v4, %v78_v6 }
  0x89   :  { %v106_v9 = vmax.f32 %v102_v7, 0.0  ;;  %v108_v10 = vmax.f32 %v104_v8, 0.0 }
  0x8b   :  { %110 = vst [vmem:[%s193_s3] sm:$0xff] %v106_v9 }
  0x8c   :  { %112 = vst [vmem:[%s193_s3 + $0x10] sm:$0xff] %v108_v10 }
  0x8e   :  { %v75_v11 = vpop.f32.mrf.mxu0  ;;  %v80_v12 = vpop.f32.mrf.mxu1 }
  0x8f   :  { %v103_v13 = vadd.f32 %v142_v4, %v75_v11  ;;  %v105_v14 = vadd.f32 %v142_v4, %v80_v12 }
  0x91   :  { %v107_v15 = vmax.f32 %v103_v13, 0.0  ;;  %v109_v16 = vmax.f32 %v105_v14, 0.0 }
  0x93   :  { %111 = vst [vmem:[%s193_s3 + $0x8] sm:$0xff] %v107_v15 }
  0x94   :  { %113 = vst [vmem:[%s193_s3 + $0x18] sm:$0xff] %v109_v16 }

// kernel: gcn_forward.5
= control target key start
LH: loop header
LB: loop body
LE: loop exit
PB: predicated region body
PF: predicated region fallthrough
CT: control target
= control target key end

     0   :  { %vm57_vm0 = vcmask 261120   ;;  %s186_s1 = inlined_call_operand.vmem [shape: bf16[32,128], index: 1, kind: input, shape index: {}]   ;;  %s187_s2 = inlined_call_operand.vmem [shape: f32[1,128], index: 2, kind: input, shape index: {}]   ;;  %s188_s0 = inlined_call_operand.vmem [shape: bf16[32,32], index: 0, kind: input, shape index: {}]   ;;  %s189_s3 = inlined_call_operand.vmem [shape: f32[32,128], index: 3, kind: output, shape index: {}]  }
   0x1   :  { %v135_v0 = vld [vmem:[%s186_s1 + $0x8] sm:$0xff]  ;;  %v134_v1 = vld [vmem:[%s186_s1] sm:$0xff] }
   0x2   :  { %70 = vmatpush.bf16.msra.mxu0 %v135_v0  ;;  %136 = vmatpush.bf16.msra.mxu1 %v135_v0  ;;  %v132_v2 = vld [vmem:[%s188_s0] sm:$0xff]  ;;  %v133_v3 = vld [vmem:[%s188_s0 + $0x8] sm:$0xff] }
   0x3   :  { %v138_v4 = vld [vmem:[%s187_s2] ss:$0 sm:$0xff] }
   0x6   :  { %71 = vmatpush.bf16.msra.mxu0 %v134_v1  ;;  %137 = vmatpush.bf16.msra.mxu1 %v134_v1 }
   0x9   :  { %130 = vmatmul.msk.bf16.vlgmr.msra.gmra.mxu0 %vm57_vm0, %v132_v2  ;;  %131 = vmatmul.msk.bf16.vlgmr.msra.gmra.mxu1 %vm57_vm0, %v133_v3 }
  0x86   :  { %v73_v5 = vpop.f32.mrf.mxu0  ;;  %v78_v6 = vpop.f32.mrf.mxu1 }
  0x87   :  { %v102_v7 = vadd.f32 %v138_v4, %v73_v5  ;;  %v104_v8 = vadd.f32 %v138_v4, %v78_v6 }
  0x89   :  { %106 = vst [vmem:[%s189_s3] sm:$0xff] %v102_v7 }
  0x8a   :  { %108 = vst [vmem:[%s189_s3 + $0x10] sm:$0xff] %v104_v8 }
  0x8e   :  { %v75_v9 = vpop.f32.mrf.mxu0  ;;  %v80_v10 = vpop.f32.mrf.mxu1 }
  0x8f   :  { %v103_v11 = vadd.f32 %v138_v4, %v75_v9  ;;  %v105_v12 = vadd.f32 %v138_v4, %v80_v10 }
  0x91   :  { %107 = vst [vmem:[%s189_s3 + $0x8] sm:$0xff] %v103_v11 }
  0x92   :  { %109 = vst [vmem:[%s189_s3 + $0x18] sm:$0xff] %v105_v12 }

</bundles_post_ra>
